<compile_context>
chip_gen: v5e
topology: v5e:2x2
jax: 0.10.0
libtpu: 0.0.40
codegen_flags: <defaults>
</compile_context>

<pallas_src>
import jax
import jax.numpy as jnp
import numpy as np
from jax.experimental import pallas as pl
from jax.experimental.pallas import tpu as pltpu


# ----------------------------- Pallas kernel --------------------------------
def graph_conv_kernel(adj_ref, feat_ref, w_ref, b_ref, out_ref, acc_ref):
    # adj_ref : (TILE_N, TILE_K)   dst-row tile x src-column tile of the adjacency
    # feat_ref: (TILE_K, F_in)     features of this tile's source nodes
    # w_ref   : (F_in, F_out)      linear weight, (in, out) layout  (resident)
    # b_ref   : (1, F_out)         linear bias                      (resident)
    # out_ref : (TILE_N, F_out)    output rows for this dst tile
    # acc_ref : (TILE_N, F_in)     f32 VMEM accumulator for the neighbor sum
    k = pl.program_id(1)

    @pl.when(k == 0)
    def _():
        acc_ref[...] = jnp.zeros_like(acc_ref)

    # Partial neighbor-sum aggregation over this source tile (MXU matmul #1).
    acc_ref[...] += jnp.dot(adj_ref[...], feat_ref[...],
                            preferred_element_type=jnp.float32)

    @pl.when(k == pl.num_programs(1) - 1)
    def _():
        # Linear + bias + ReLU on the fully aggregated features (MXU matmul #2 + VPU).
        h = jnp.dot(acc_ref[...], w_ref[...],
                    preferred_element_type=jnp.float32) + b_ref[...]
        out_ref[...] = jnp.maximum(h, 0.0).astype(out_ref.dtype)


# ------------------------------ host wrapper ---------------------------------
def graph_conv_forward(adj, feat, w, b, *, tile_n=128, tile_k=128):
    """adj: (N, N) dense dst x src adjacency; feat: (N, F_in); w: (F_in, F_out); b: (F_out,)."""
    n = adj.shape[0]
    f_in = feat.shape[1]
    f_out = w.shape[1]

    # Pad destination rows to a tile_n multiple and source columns to a tile_k multiple.
    # Padded source columns / feature rows are zero, so they contribute nothing to the
    # aggregation; padded destination rows are sliced off at the end.
    n_rows = pl.cdiv(n, tile_n) * tile_n
    n_cols = pl.cdiv(n, tile_k) * tile_k

    adj_p = jnp.pad(adj.astype(jnp.float32), ((0, n_rows - n), (0, n_cols - n)))
    feat_p = jnp.pad(feat.astype(jnp.float32), ((0, n_cols - n), (0, 0)))
    w_p = w.astype(jnp.float32)
    b2 = b.reshape(1, f_out).astype(jnp.float32)

    grid = (n_rows // tile_n, n_cols // tile_k)

    out = pl.pallas_call(
        graph_conv_kernel,
        out_shape=jax.ShapeDtypeStruct((n_rows, f_out), jnp.float32),
        grid_spec=pltpu.PrefetchScalarGridSpec(
            num_scalar_prefetch=0,
            grid=grid,
            in_specs=[
                pl.BlockSpec((tile_n, tile_k), lambda i, k: (i, k)),  # adjacency tile
                pl.BlockSpec((tile_k, f_in), lambda i, k: (k, 0)),    # source features
                pl.BlockSpec((f_in, f_out), lambda i, k: (0, 0)),     # weight (resident)
                pl.BlockSpec((1, f_out), lambda i, k: (0, 0)),        # bias   (resident)
            ],
            out_specs=pl.BlockSpec((tile_n, f_out), lambda i, k: (i, 0)),
            scratch_shapes=[pltpu.VMEM((tile_n, f_in), jnp.float32)],
        ),
        compiler_params=pltpu.CompilerParams(
            dimension_semantics=("parallel", "arbitrary"),
        ),
    )(adj_p, feat_p, w_p, b2)

    return out[:n]


# ------------------------------ pure-JAX reference ---------------------------
def reference_forward(adj, feat, w, b):
    return jnp.maximum(adj @ feat @ w + b.reshape(1, -1), 0.0)


# ----------------------------------- main -------------------------------------
if __name__ == "__main__":
    # Small demo, but large enough to exercise the 2-D grid + accumulator path.
    N = 300       # nodes (not a tile multiple -> exercises the padding path)
    F_IN = 64     # in_feats
    F_OUT = 128   # out_feats (lane-dense output)

    key = jax.random.PRNGKey(0)
    k_adj, k_feat, k_w, k_b = jax.random.split(key, 4)

    # Random sparse-ish directed graph as a dense dst x src 0/1 adjacency matrix.
    adj = (jax.random.uniform(k_adj, (N, N)) < 0.1).astype(jnp.float32)
    # Node features.
    feat = jax.random.normal(k_feat, (N, F_IN), jnp.float32)

    # nn.Linear(in_feats, out_feats) default init, stored as (in, out).
    bound = float(np.sqrt(1.0 / F_IN))
    w = jax.random.uniform(k_w, (F_IN, F_OUT), jnp.float32, -bound, bound)
    b = jax.random.uniform(k_b, (F_OUT,), jnp.float32, -bound, bound)

    out = graph_conv_forward(adj, feat, w, b, tile_n=128, tile_k=128)
    out = jax.block_until_ready(out)

    ref = reference_forward(adj, feat, w, b)
    np.testing.assert_allclose(np.asarray(out), np.asarray(ref), rtol=1e-5, atol=1e-5)

    print("KERNEL_OK")
</pallas_src>

<mosaic_0001>
module attributes {stable_mosaic.version = 11 : i64} {
  func.func @graph_conv_kernel(%arg0: i32, %arg1: i32, %arg2: memref<128x128xf32, #tpu.memory_space<vmem>>, %arg3: memref<128x64xf32, #tpu.memory_space<vmem>>, %arg4: memref<64x128xf32, #tpu.memory_space<vmem>>, %arg5: memref<1x128xf32, #tpu.memory_space<vmem>>, %arg6: memref<128x128xf32, #tpu.memory_space<vmem>>, %arg7: memref<128x64xf32, #tpu.memory_space<vmem>>) attributes {dimension_semantics = [#tpu.dimension_semantics<parallel>, #tpu.dimension_semantics<arbitrary>], iteration_bounds = array<i64: 3, 3>, scalar_prefetch = 0 : i64, scratch_operands = 1 : i64, tpu.core_type = #tpu.core_type<tc>, window_params = [{transform_indices = @transform_0, window_bounds = array<i64: 128, 128>}, {transform_indices = @transform_1, window_bounds = array<i64: 128, 64>}, {pipeline_mode = #tpu.pipeline_mode<synchronous>, transform_indices = @transform_2, window_bounds = array<i64: 64, 128>}, {pipeline_mode = #tpu.pipeline_mode<synchronous>, transform_indices = @transform_3, window_bounds = array<i64: 1, 128>}, {transform_indices = @transform_4, window_bounds = array<i64: 128, 128>}]} {
    %c0_i32 = arith.constant 0 : i32
    %0 = arith.cmpi eq, %arg1, %c0_i32 : i32
    %1 = arith.extui %0 : i1 to i32
    %c0_i32_0 = arith.constant 0 : i32
    %2 = arith.cmpi ne, %1, %c0_i32_0 : i32
    scf.if %2 {
      %cst_9 = arith.constant 0.000000e+00 : f32
      %12 = vector.broadcast %cst_9 : f32 to vector<128x64xf32>
      %c0_10 = arith.constant 0 : index
      %c0_11 = arith.constant 0 : index
      %13 = vector.load %arg7[%c0_10, %c0_11] : memref<128x64xf32, #tpu.memory_space<vmem>>, vector<128x64xf32>
      tpu.vector_store %arg7[%c0_10, %c0_11], %12 {strides = array<i32>} : memref<128x64xf32, #tpu.memory_space<vmem>>, vector<128x64xf32>,
    } else {
    }
    %c0 = arith.constant 0 : index
    %c0_1 = arith.constant 0 : index
    %3 = vector.load %arg7[%c0, %c0_1] : memref<128x64xf32, #tpu.memory_space<vmem>>, vector<128x64xf32>
    %c0_2 = arith.constant 0 : index
    %c0_3 = arith.constant 0 : index
    %4 = vector.load %arg2[%c0_2, %c0_3] : memref<128x128xf32, #tpu.memory_space<vmem>>, vector<128x128xf32>
    %c0_4 = arith.constant 0 : index
    %c0_5 = arith.constant 0 : index
    %5 = vector.load %arg3[%c0_4, %c0_5] : memref<128x64xf32, #tpu.memory_space<vmem>>, vector<128x64xf32>
    %cst = arith.constant dense<0.000000e+00> : vector<128x64xf32>
    %6 = tpu.matmul %4, %5, %cst {dimension_numbers = #tpu.dot_dimension_numbers<[1], [0], [0], [1], [0, 0, 1, 1], [], []>} : vector<128x128xf32>, vector<128x64xf32>, vector<128x64xf32> -> vector<128x64xf32>
    %7 = arith.addf %3, %6 : vector<128x64xf32>
    %c0_6 = arith.constant 0 : index
    %c0_7 = arith.constant 0 : index
    %8 = vector.load %arg7[%c0_6, %c0_7] : memref<128x64xf32, #tpu.memory_space<vmem>>, vector<128x64xf32>
    tpu.vector_store %arg7[%c0_6, %c0_7], %7 {strides = array<i32>} : memref<128x64xf32, #tpu.memory_space<vmem>>, vector<128x64xf32>,
    %c2_i32 = arith.constant 2 : i32
    %9 = arith.cmpi eq, %arg1, %c2_i32 : i32
    %10 = arith.extui %9 : i1 to i32
    %c0_i32_8 = arith.constant 0 : i32
    %11 = arith.cmpi ne, %10, %c0_i32_8 : i32
    scf.if %11 {
      %c0_9 = arith.constant 0 : index
      %c0_10 = arith.constant 0 : index
      %12 = vector.load %arg7[%c0_9, %c0_10] : memref<128x64xf32, #tpu.memory_space<vmem>>, vector<128x64xf32>
      %c0_11 = arith.constant 0 : index
      %c0_12 = arith.constant 0 : index
      %13 = vector.load %arg4[%c0_11, %c0_12] : memref<64x128xf32, #tpu.memory_space<vmem>>, vector<64x128xf32>
      %cst_13 = arith.constant dense<0.000000e+00> : vector<128x128xf32>
      %14 = tpu.matmul %12, %13, %cst_13 {dimension_numbers = #tpu.dot_dimension_numbers<[1], [0], [0], [1], [0, 0, 1, 1], [], []>} : vector<128x64xf32>, vector<64x128xf32>, vector<128x128xf32> -> vector<128x128xf32>
      %c0_14 = arith.constant 0 : index
      %c0_15 = arith.constant 0 : index
      %15 = vector.load %arg5[%c0_14, %c0_15] : memref<1x128xf32, #tpu.memory_space<vmem>>, vector<1x128xf32>
      %16 = vector.broadcast %15 : vector<1x128xf32> to vector<128x128xf32>
      %17 = arith.addf %14, %16 : vector<128x128xf32>
      %cst_16 = arith.constant 0.000000e+00 : f32
      %18 = vector.broadcast %cst_16 : f32 to vector<128x128xf32>
      %19 = arith.maximumf %17, %18 : vector<128x128xf32>
      %c0_17 = arith.constant 0 : index
      %c0_18 = arith.constant 0 : index
      %20 = vector.load %arg6[%c0_17, %c0_18] : memref<128x128xf32, #tpu.memory_space<vmem>>, vector<128x128xf32>
      tpu.vector_store %arg6[%c0_17, %c0_18], %19 {strides = array<i32>} : memref<128x128xf32, #tpu.memory_space<vmem>>, vector<128x128xf32>,
    } else {
    }
    return
  }
  func.func @transform_0(%arg0: i32, %arg1: i32) -> (i32, i32) {
    %c0_i32 = arith.constant 0 : i32
    return %arg0, %arg1 : i32, i32
  }
  func.func @transform_1(%arg0: i32, %arg1: i32) -> (i32, i32) {
    %c0_i32 = arith.constant 0 : i32
    %c0_i32_0 = arith.constant 0 : i32
    return %arg1, %c0_i32 : i32, i32
  }
  func.func @transform_2(%arg0: i32, %arg1: i32) -> (i32, i32) {
    %c0_i32 = arith.constant 0 : i32
    %c0_i32_0 = arith.constant 0 : i32
    %c0_i32_1 = arith.constant 0 : i32
    return %c0_i32, %c0_i32_0 : i32, i32
  }
  func.func @transform_3(%arg0: i32, %arg1: i32) -> (i32, i32) {
    %c0_i32 = arith.constant 0 : i32
    %c0_i32_0 = arith.constant 0 : i32
    %c0_i32_1 = arith.constant 0 : i32
    return %c0_i32, %c0_i32_0 : i32, i32
  }
  func.func @transform_4(%arg0: i32, %arg1: i32) -> (i32, i32) {
    %c0_i32 = arith.constant 0 : i32
    %c0_i32_0 = arith.constant 0 : i32
    return %arg0, %c0_i32 : i32, i32
  }
}

</mosaic_0001>

<bundles_post_ra>
// kernel: tpu_custom_call.1
= control target key start
LH: loop header
LB: loop body
LE: loop exit
PB: predicated region body
PF: predicated region fallthrough
CT: control target
= control target key end

     0   :  { %9 = vsyncpa [#allocation4], 0  ;;  %s1426_s0 = inlined_call_operand.hbm [shape: f32[384,384], index: 0, kind: input, shape index: {}]   ;;  %s1427_s1 = inlined_call_operand.vmem [shape: f32[384,64], index: 1, kind: input, shape index: {}]   ;;  %s1428_s2 = inlined_call_operand.vmem [shape: f32[64,128], index: 2, kind: input, shape index: {}]   ;;  %s1429_s3 = inlined_call_operand.vmem [shape: f32[1,128], index: 3, kind: input, shape index: {}]   ;;  %s1430_s4 = inlined_call_operand.hbm [shape: f32[384,128], index: 4, kind: output, shape index: {}]  }
   0x1   :  { %11 = vsyncpa [#allocation4 + $0x1], 0 }
   0x2   :  { %12 = vsyncpa [#allocation5], 0 }
   0x3   :  { %14 = vsyncpa [#allocation5 + $0x1], 0  ;;  %s1120_s15 = smov 0   ;;  %s1122_s16 = smov 0  }
   0x4   :  { %s1124_s17 = smov 0   ;;  %s1126_s18 = smov 0  }
   0x5   :  { %s1128_s19 = smov 0   ;;  %s1130_s20 = smov 0  }
   0x6   :  { %s1132_s21 = smov 0   ;;  %s1134_s22 = smov 0  }
   0x7   :  { %s1136_s23 = smov 0   ;;  %s1138_s24 = smov 0  }
   0x8   :  { %s1140_s25 = smov 0  }
   0x9 LB: > { %1436 = sst [smem:[#allocation9_spill]] %s1055_s17  ;;  %s716_s26 = sadd.s32 4294967295, %s1087_s25   ;;  %s1087_s25 = sphi %s1140_s25, %s20_s25   ;;  %s1083_s24 = sphi %s1138_s24, %s1461_s24   ;;  %s1079_s23 = sphi %s1136_s23, %s1460_s23   ;;  %s1075_s22 = sphi %s1134_s22, %s1459_s22   ;;  %s1071_s21 = sphi %s1132_s21, %s1458_s21   ;;  %s1067_s20 = sphi %s1130_s20, %s1451_s20   ;;  %s1063_s19 = sphi %s1128_s19, %s1457_s19   ;;  %s1059_s18 = sphi %s1126_s18, %s1456_s18   ;;  %s1055_s17 = sphi %s1124_s17, %s1449_s17   ;;  %s1051_s16 = sphi %s1122_s16, %s1455_s16   ;;  %s1047_s15 = sphi %s1120_s15, %s1454_s15  }
   0xa   : > { %1437 = sst [smem:[#allocation10_spill]] %s1067_s20  ;;  %s717_s27 = sadd.s32 4294967294, %s1087_s25  }
   0xb   : > { %s29_s28 = sadd.s32 1, %s1079_s23  ;;  %s32_s29 = sadd.s32 1, %s1083_s24 }
   0xc   : > { %p30_p0 = scmp.ge.s32.totalorder %s29_s28, 3  ;;  %s41_s30 = sadd.s32 1, %s1067_s20 }
   0xd   : > { %p48_p1 = scmp.ne.s32.totalorder %s1067_s20, %s1063_s19  ;;  %p49_p2 = scmp.eq.s32.totalorder %s1087_s25, 0 }
   0xe   : > { %s1463_s28 = smov (%p30_p0, %s29_s28), 0  ;;  %s1465_s29 = smov (!%p30_p0, %s32_s29), %s1083_s24 }
   0xf   : > { %1438 = sst [smem:[#allocation11_spill]] %s1463_s28  ;;  %s37_s5 = ssub.s32 %s1079_s23, %s1463_s28 }
  0x10   : > { %p1186_p3 = por %p49_p2, %p48_p1  ;;  %p34_p4 = scmp.ge.s32.totalorder %s1465_s29, 3 }
  0x11   : > { %p54_p5 = scmp.ne.s32.totalorder %s1063_s19, %s1059_s18  ;;  %p55_p6 = scmp.eq.s32.totalorder %s716_s26, 0 }
  0x12   : > { %s135_s7 = sadd.s32 1, %s1055_s17  ;;  %s1467_s29 = smov (%p34_p4, %s1465_s29), 0 }
  0x13   : > { %1440 = sst [smem:[#allocation12_spill]] %s1467_s29  ;;  %p1194_p7 = por %p55_p6, %p54_p5 }
  0x14   : > { %p145_p8 = scmp.ne.s32.totalorder %s1055_s17, %s1051_s16  ;;  %s36_s9 = ssub.s32 %s1083_s24, %s1467_s29 }
  0x15   : > { %p146_p9 = scmp.eq.s32.totalorder %s716_s26, 8  ;;  %s38_s10 = sor.u32 %s37_s5, %s36_s9 }
  0x16   : > { %p133_p10 = scmp.eq.s32.totalorder %s36_s9, 0  ;;  %p39_p11 = scmp.eq.s32.totalorder %s38_s10, 0 }
  0x17   : > { %p1202_p12 = por %p146_p9, %p145_p8  ;;  %p151_p13 = scmp.ne.s32.totalorder %s1051_s16, %s1047_s15 }
  0x18   : > { %s1207_s12 = scalar_select %p133_p10, %s1055_s17, %s135_s7  }
  0x19   : > { %s1210_s13 = scalar_select %p39_p11, %s1067_s20, %s41_s30  }
  0x1a   : > { %1443 = sst [smem:[#allocation13_spill]] %s1207_s12  ;;  %p152_p0 = scmp.eq.s32.totalorder %s717_s27, 8 }
  0x1b   : > { %1444 = sst [smem:[#allocation14_spill]] %s1210_s13  ;;  %p838_p1 = scmp.lt.s32.totalorder %s1087_s25, 9 }
  0x1c   : > { %p1215_p2 = por %p152_p0, %p151_p13  ;;  %s178_s18 = sand.u32 1, %s1067_s20  }
  0x1d   : > { %s720_s26 = sshll.u32 %s178_s18, 7  ;;  %s825_s5 = smul.u32 48, %s1083_s24 }
  0x1e   : > { %s1445_s14 = scalar_select %p1215_p2, 1, 0 }
  0x1f   : > { %s182_s9 = scalar_lea.vmem [#allocation3], %s720_s26  ;;  %p831_p4 = pnand %p838_p1, %p1186_p3 }
  0x20   : > { %1446 = sst [smem:[#allocation15_spill]] %s1445_s14  ;;  %s192_s10 = sshll.u32 %s182_s9, 4  ;;  %s193_s10 = int_to_ptr.vmem [resolvable:$true] %s192_s10 }
  0x21   : > { %s187_s7 = sadd.s32 %s1079_s23, %s825_s5  ;;  %s179_s12 = scalar_lea.sflag [#allocation4], %s178_s18 }
  0x22   : > { %s723_s30 = sshll.u32 %s187_s7, 3  ;;  %s1089_s17 = smov 384  }
  0x23   : > { %s189_s27 = scalar_lea.hbm %s1426_s0, %s723_s30  ;;  %s1090_s20 = smov 128  }
  0x24   : > { %s190_s13 = sshll.u32 %s189_s27, 4  ;;  %s1091_s14 = smov 8   ;;  %s191_s13 = int_to_ptr.hbm [resolvable:$true] %s190_s13 }
  0x25   : > { %833 = dma.hbm_to_vmem [thread:$0]  (!%p831_p4), %s191_s13, 2048, %s193_s10, %s179_s12, %s1089_s17, %s1090_s20, %s1091_s14  }
  0x26   : > { %p724_p5 = scmp.ge.s32.totalorder %s1087_s25, 1  ;;  %p209_p6 = scmp.lt.s32.totalorder %s1087_s25, 10 }
  0x28   : > { %p210_p8 = pnand %p724_p5, %p209_p6 }
  0x29   : > { %s215_s6 = sand.u32 (!%p210_p8), 1, %s1063_s19  }
  0x2a   : > { %213 = sbr.rel (%p210_p8) target bundleno = 460 (0x1cc), region = 36  ;;  %s725_s26 = sshll.u32 (!%p210_p8), %s215_s6, 7 }
  0x2b   : > { %s216_s5 = scalar_lea.sflag (!%p210_p8), [#allocation4], %s215_s6  ;;  %s1230_s9 = scalar_lea.vmem (!%p210_p8), [#allocation3], %s725_s26 }
  0x2f   : > { %1038 = dma.done.wait (%p1194_p7), %s216_s5, 2048  }
  0x30   : > { %1040 = vsyncadd (%p1194_p7), %s216_s5, 4294965248  ;;  %s247_s17 = sand.u32 1, %s1051_s16   ;;  %s727_s20 = sshll.u32 %s1071_s21, 4 }
  0x31   : > { %s726_s28 = sshll.u32 %s247_s17, 7  ;;  %p252_p3 = scmp.lt.s32.totalorder %s727_s20, 47 }
  0x32   : > { %s1245_s18 = scalar_lea.vmem [#allocation6], %s726_s28  ;;  %p729_p9 = scmp.ne.s32.totalorder %s1071_s21, 0 }
  0x33   : > { %s1469_s20 = smov (!%p252_p3, %s727_s20), 47 }
  0x34   : > { %s728_s29 = sshll.u32 %s1469_s20, 3  ;;  %261 = sbr.rel (%p729_p9) target bundleno = 74 (0x4a), region = 44 }
  0x35   : > { %s1243_s14 = scalar_lea.vmem %s1427_s1, %s728_s29 }
  0x39   : > { %vm262_vm0 = vcmask 523264   ;;  %v1092_v0 = vmov 0.0  }
  0x3a   : > { %263 = vst.msk [vmem:[#allocation2] sm:$0xff] %vm262_vm0, %v1092_v0 }
  0x3b   : > { %264 = vst.msk [vmem:[#allocation2 + $0x8] sm:$0xff] %vm262_vm0, %v1092_v0 }
  0x3c   : > { %265 = vst.msk [vmem:[#allocation2 + $0x10] sm:$0xff] %vm262_vm0, %v1092_v0 }
  0x3d   : > { %266 = vst.msk [vmem:[#allocation2 + $0x18] sm:$0xff] %vm262_vm0, %v1092_v0 }
  0x3e   : > { %267 = vst.msk [vmem:[#allocation2 + $0x20] sm:$0xff] %vm262_vm0, %v1092_v0 }
  0x3f   : > { %268 = vst.msk [vmem:[#allocation2 + $0x28] sm:$0xff] %vm262_vm0, %v1092_v0 }
  0x40   : > { %269 = vst.msk [vmem:[#allocation2 + $0x30] sm:$0xff] %vm262_vm0, %v1092_v0 }
  0x41   : > { %270 = vst.msk [vmem:[#allocation2 + $0x38] sm:$0xff] %vm262_vm0, %v1092_v0 }
  0x42   : > { %271 = vst.msk [vmem:[#allocation2 + $0x40] sm:$0xff] %vm262_vm0, %v1092_v0 }
  0x43   : > { %272 = vst.msk [vmem:[#allocation2 + $0x48] sm:$0xff] %vm262_vm0, %v1092_v0 }
  0x44   : > { %273 = vst.msk [vmem:[#allocation2 + $0x50] sm:$0xff] %vm262_vm0, %v1092_v0 }
  0x45   : > { %274 = vst.msk [vmem:[#allocation2 + $0x58] sm:$0xff] %vm262_vm0, %v1092_v0 }
  0x46   : > { %275 = vst.msk [vmem:[#allocation2 + $0x60] sm:$0xff] %vm262_vm0, %v1092_v0 }
  0x47   : > { %276 = vst.msk [vmem:[#allocation2 + $0x68] sm:$0xff] %vm262_vm0, %v1092_v0 }
  0x48   : > { %277 = vst.msk [vmem:[#allocation2 + $0x70] sm:$0xff] %vm262_vm0, %v1092_v0 }
  0x49   : > { %278 = vst.msk [vmem:[#allocation2 + $0x78] sm:$0xff] %vm262_vm0, %v1092_v0 }
  0x4a PF: > { %v326_v1 = vld [vmem:[%s1243_s14 + $0x78] sm:$0xff]  ;;  %v325_v2 = vld [vmem:[%s1243_s14 + $0x70] sm:$0xff]  ;;  %v324_v3 = vld [vmem:[%s1243_s14 + $0x68] sm:$0xff]  ;;  %vm408_vm1 = vcmask 523264   ;;  %p730_p7 = scmp.ne.s32.totalorder %s1071_s21, 2 }
  0x4b   : > { %754 = vmatpush.msra.mxu2 %v326_v1  ;;  %755 = vmatpush.msra.mxu3 %v326_v1  ;;  %v323_v4 = vld [vmem:[%s1243_s14 + $0x60] sm:$0xff]  ;;  %v322_v5 = vld [vmem:[%s1243_s14 + $0x58] sm:$0xff]  ;;  %v321_v6 = vld [vmem:[%s1243_s14 + $0x50] sm:$0xff] }
  0x4c   : > { %327 = vmatpush.msra.mxu0 %v326_v1  ;;  %753 = vmatpush.msra.mxu1 %v326_v1  ;;  %v320_v7 = vld [vmem:[%s1243_s14 + $0x48] sm:$0xff]  ;;  %v319_v8 = vld [vmem:[%s1243_s14 + $0x40] sm:$0xff]  ;;  %v318_v9 = vld [vmem:[%s1243_s14 + $0x38] sm:$0xff] }
  0x4d   : > { %757 = vmatpush.msra.mxu2 %v325_v2  ;;  %758 = vmatpush.msra.mxu3 %v325_v2  ;;  %v317_v10 = vld [vmem:[%s1243_s14 + $0x30] sm:$0xff]  ;;  %v316_v11 = vld [vmem:[%s1243_s14 + $0x28] sm:$0xff]  ;;  %v315_v12 = vld [vmem:[%s1243_s14 + $0x20] sm:$0xff] }
  0x4e   : > { %328 = vmatpush.msra.mxu0 %v325_v2  ;;  %756 = vmatpush.msra.mxu1 %v325_v2  ;;  %v314_v13 = vld [vmem:[%s1243_s14 + $0x18] sm:$0xff]  ;;  %v313_v14 = vld [vmem:[%s1243_s14 + $0x10] sm:$0xff]  ;;  %v312_v15 = vld [vmem:[%s1243_s14 + $0x8] sm:$0xff] }
  0x4f   : > { %760 = vmatpush.msra.mxu2 %v324_v3  ;;  %761 = vmatpush.msra.mxu3 %v324_v3  ;;  %v311_v16 = vld [vmem:[%s1243_s14] sm:$0xff]  ;;  %v304_v21 = vld [vmem:[%s1230_s9 + $0x48] sm:$0xff]  ;;  %v305_v25 = vld [vmem:[%s1230_s9 + $0x50] sm:$0xff] }
  0x50   : > { %329 = vmatpush.msra.mxu0 %v324_v3  ;;  %759 = vmatpush.msra.mxu1 %v324_v3  ;;  %v303_v17 = vld [vmem:[%s1230_s9 + $0x40] sm:$0xff]  ;;  %v308_v22 = vld [vmem:[%s1230_s9 + $0x68] sm:$0xff]  ;;  %v309_v26 = vld [vmem:[%s1230_s9 + $0x70] sm:$0xff] }
  0x51   : > { %763 = vmatpush.msra.mxu2 %v323_v4  ;;  %764 = vmatpush.msra.mxu3 %v323_v4  ;;  %v307_v18 = vld [vmem:[%s1230_s9 + $0x60] sm:$0xff]  ;;  %v296_v23 = vld [vmem:[%s1230_s9 + $0x8] sm:$0xff]  ;;  %v297_v27 = vld [vmem:[%s1230_s9 + $0x10] sm:$0xff] }
  0x52   : > { %330 = vmatpush.msra.mxu0 %v323_v4  ;;  %762 = vmatpush.msra.mxu1 %v323_v4  ;;  %v295_v19 = vld [vmem:[%s1230_s9] sm:$0xff]  ;;  %v300_v24 = vld [vmem:[%s1230_s9 + $0x28] sm:$0xff]  ;;  %v301_v28 = vld [vmem:[%s1230_s9 + $0x30] sm:$0xff] }
  0x53   : > { %766 = vmatpush.msra.mxu2 %v322_v5  ;;  %767 = vmatpush.msra.mxu3 %v322_v5  ;;  %v299_v20 = vld [vmem:[%s1230_s9 + $0x20] sm:$0xff]  ;;  %v306_v29 = vld [vmem:[%s1230_s9 + $0x58] sm:$0xff]  ;;  %v280_v45 = vld [vmem:[#allocation2 + $0x8] sm:$0xff] }
  0x54   : > { %331 = vmatpush.msra.mxu0 %v322_v5  ;;  %765 = vmatpush.msra.mxu1 %v322_v5  ;;  %v310_v30 = vld [vmem:[%s1230_s9 + $0x78] sm:$0xff]  ;;  %v279_v33 = vld [vmem:[#allocation2] sm:$0xff]  ;;  %v284_v46 = vld [vmem:[#allocation2 + $0x28] sm:$0xff] }
  0x55   : > { %769 = vmatpush.msra.mxu2 %v321_v6  ;;  %770 = vmatpush.msra.mxu3 %v321_v6  ;;  %v298_v31 = vld [vmem:[%s1230_s9 + $0x18] sm:$0xff]  ;;  %v283_v34 = vld [vmem:[#allocation2 + $0x20] sm:$0xff]  ;;  %v288_v51 = vld [vmem:[#allocation2 + $0x48] sm:$0xff] }
  0x56   : > { %332 = vmatpush.msra.mxu0 %v321_v6  ;;  %768 = vmatpush.msra.mxu1 %v321_v6  ;;  %v302_v32 = vld [vmem:[%s1230_s9 + $0x38] sm:$0xff]  ;;  %v287_v39 = vld [vmem:[#allocation2 + $0x40] sm:$0xff]  ;;  %v292_v52 = vld [vmem:[#allocation2 + $0x68] sm:$0xff] }
  0x57   : > { %772 = vmatpush.msra.mxu2 %v320_v7  ;;  %773 = vmatpush.msra.mxu3 %v320_v7  ;;  %v291_v40 = vld [vmem:[#allocation2 + $0x60] sm:$0xff]  ;;  %v281_v57 = vld [vmem:[#allocation2 + $0x10] sm:$0xff]  ;;  %v282_v5 = vld [vmem:[#allocation2 + $0x18] sm:$0xff] }
  0x58   : > { %333 = vmatpush.msra.mxu0 %v320_v7  ;;  %771 = vmatpush.msra.mxu1 %v320_v7  ;;  %v285_v58 = vld [vmem:[#allocation2 + $0x30] sm:$0xff]  ;;  %v286_v6 = vld [vmem:[#allocation2 + $0x38] sm:$0xff] }
  0x59   : > { %775 = vmatpush.msra.mxu2 %v319_v8  ;;  %776 = vmatpush.msra.mxu3 %v319_v8  ;;  %v289_v63 = vld [vmem:[#allocation2 + $0x50] sm:$0xff] }
  0x5a   : > { %334 = vmatpush.msra.mxu0 %v319_v8  ;;  %774 = vmatpush.msra.mxu1 %v319_v8  ;;  %v293_v0 = vld [vmem:[#allocation2 + $0x70] sm:$0xff] }
  0x5b   : > { %778 = vmatpush.msra.mxu2 %v318_v9  ;;  %779 = vmatpush.msra.mxu3 %v318_v9 }
  0x5c   : > { %335 = vmatpush.msra.mxu0 %v318_v9  ;;  %777 = vmatpush.msra.mxu1 %v318_v9 }
  0x5d   : > { %781 = vmatpush.msra.mxu2 %v317_v10  ;;  %782 = vmatpush.msra.mxu3 %v317_v10 }
  0x5e   : > { %336 = vmatpush.msra.mxu0 %v317_v10  ;;  %780 = vmatpush.msra.mxu1 %v317_v10 }
  0x5f   : > { %784 = vmatpush.msra.mxu2 %v316_v11  ;;  %785 = vmatpush.msra.mxu3 %v316_v11 }
  0x60   : > { %337 = vmatpush.msra.mxu0 %v316_v11  ;;  %783 = vmatpush.msra.mxu1 %v316_v11  ;;  %v290_v11 = vld [vmem:[#allocation2 + $0x58] sm:$0xff] }
  0x61   : > { %787 = vmatpush.msra.mxu2 %v315_v12  ;;  %788 = vmatpush.msra.mxu3 %v315_v12 }
  0x62   : > { %338 = vmatpush.msra.mxu0 %v315_v12  ;;  %786 = vmatpush.msra.mxu1 %v315_v12  ;;  %v294_v12 = vld [vmem:[#allocation2 + $0x78] sm:$0xff] }
  0x63   : > { %790 = vmatpush.msra.mxu2 %v314_v13  ;;  %791 = vmatpush.msra.mxu3 %v314_v13 }
  0x64   : > { %339 = vmatpush.msra.mxu0 %v314_v13  ;;  %789 = vmatpush.msra.mxu1 %v314_v13 }
  0x65   : > { %793 = vmatpush.msra.mxu2 %v313_v14  ;;  %794 = vmatpush.msra.mxu3 %v313_v14 }
  0x66   : > { %340 = vmatpush.msra.mxu0 %v313_v14  ;;  %792 = vmatpush.msra.mxu1 %v313_v14 }
  0x67   : > { %796 = vmatpush.msra.mxu2 %v312_v15  ;;  %797 = vmatpush.msra.mxu3 %v312_v15 }
  0x68   : > { %341 = vmatpush.msra.mxu0 %v312_v15  ;;  %795 = vmatpush.msra.mxu1 %v312_v15 }
  0x69   : > { %799 = vmatpush.msra.mxu2 %v311_v16  ;;  %800 = vmatpush.msra.mxu3 %v311_v16 }
  0x6a   : > { %367 = vmatmul.f32.vlgmr.msra.gmra.mxu2 %v303_v17  ;;  %379 = vmatmul.f32.vlgmr.msra.gmra.mxu3 %v307_v18 }
  0x6b   : > { %342 = vmatpush.msra.mxu0 %v311_v16  ;;  %798 = vmatpush.msra.mxu1 %v311_v16 }
  0x6c   : > { %343 = vmatmul.f32.vlgmr.msra.gmra.mxu0 %v295_v19  ;;  %355 = vmatmul.f32.vlgmr.msra.gmra.mxu1 %v299_v20 }
  0x72   : > { %370 = vmatmul.f32.gmra.mxu2 %v304_v21  ;;  %382 = vmatmul.f32.gmra.mxu3 %v308_v22 }
  0x74   : > { %346 = vmatmul.f32.gmra.mxu0 %v296_v23  ;;  %358 = vmatmul.f32.gmra.mxu1 %v300_v24 }
  0x7a   : > { %373 = vmatmul.f32.gmra.mxu2 %v305_v25  ;;  %385 = vmatmul.f32.gmra.mxu3 %v309_v26 }
  0x7c   : > { %349 = vmatmul.f32.gmra.mxu0 %v297_v27  ;;  %361 = vmatmul.f32.gmra.mxu1 %v301_v28 }
  0x82   : > { %376 = vmatmul.f32.gmra.mxu2 %v306_v29  ;;  %388 = vmatmul.f32.gmra.mxu3 %v310_v30 }
  0x84   : > { %352 = vmatmul.f32.gmra.mxu0 %v298_v31  ;;  %364 = vmatmul.f32.gmra.mxu1 %v302_v32 }
  0xe9   : > { %v344_v35 = vpop.f32.mrf.mxu0  ;;  %v356_v36 = vpop.f32.mrf.mxu1 }
  0xea   : > { %v392_v37 = vadd.f32 %v344_v35, %v279_v33  ;;  %v396_v38 = vadd.f32 %v356_v36, %v283_v34 }
  0xec   : > { %409 = vst.msk [vmem:[#allocation2] sm:$0xff] %vm408_vm1, %v392_v37 }
  0xed   : > { %413 = vst.msk [vmem:[#allocation2 + $0x20] sm:$0xff] %vm408_vm1, %v396_v38  ;;  %v368_v41 = vpop.f32.mrf.mxu2  ;;  %v380_v42 = vpop.f32.mrf.mxu3 }
  0xee   : > { %v400_v43 = vadd.f32 %v368_v41, %v287_v39  ;;  %v404_v44 = vadd.f32 %v380_v42, %v291_v40 }
  0xf0   : > { %417 = vst.msk [vmem:[#allocation2 + $0x40] sm:$0xff] %vm408_vm1, %v400_v43 }
  0xf1   : > { %421 = vst.msk [vmem:[#allocation2 + $0x60] sm:$0xff] %vm408_vm1, %v404_v44  ;;  %v347_v47 = vpop.f32.mrf.mxu0  ;;  %v359_v48 = vpop.f32.mrf.mxu1 }
  0xf2   : > { %v393_v49 = vadd.f32 %v347_v47, %v280_v45  ;;  %v397_v50 = vadd.f32 %v359_v48, %v284_v46 }
  0xf4   : > { %410 = vst.msk [vmem:[#allocation2 + $0x8] sm:$0xff] %vm408_vm1, %v393_v49 }
  0xf5   : > { %414 = vst.msk [vmem:[#allocation2 + $0x28] sm:$0xff] %vm408_vm1, %v397_v50  ;;  %v371_v53 = vpop.f32.mrf.mxu2  ;;  %v383_v54 = vpop.f32.mrf.mxu3 }
  0xf6   : > { %v401_v55 = vadd.f32 %v371_v53, %v288_v51  ;;  %v405_v56 = vadd.f32 %v383_v54, %v292_v52 }
  0xf8   : > { %418 = vst.msk [vmem:[#allocation2 + $0x48] sm:$0xff] %vm408_vm1, %v401_v55 }
  0xf9   : > { %422 = vst.msk [vmem:[#allocation2 + $0x68] sm:$0xff] %vm408_vm1, %v405_v56  ;;  %v350_v59 = vpop.f32.mrf.mxu0  ;;  %v362_v60 = vpop.f32.mrf.mxu1 }
  0xfa   : > { %v394_v61 = vadd.f32 %v350_v59, %v281_v57  ;;  %v398_v62 = vadd.f32 %v362_v60, %v285_v58 }
  0xfc   : > { %411 = vst.msk [vmem:[#allocation2 + $0x10] sm:$0xff] %vm408_vm1, %v394_v61 }
  0xfd   : > { %415 = vst.msk [vmem:[#allocation2 + $0x30] sm:$0xff] %vm408_vm1, %v398_v62  ;;  %v374_v1 = vpop.f32.mrf.mxu2  ;;  %v386_v2 = vpop.f32.mrf.mxu3 }
  0xfe   : > { %v402_v3 = vadd.f32 %v374_v1, %v289_v63  ;;  %v406_v4 = vadd.f32 %v386_v2, %v293_v0 }
 0x100   : > { %419 = vst.msk [vmem:[#allocation2 + $0x50] sm:$0xff] %vm408_vm1, %v402_v3 }
 0x101   : > { %423 = vst.msk [vmem:[#allocation2 + $0x70] sm:$0xff] %vm408_vm1, %v406_v4  ;;  %v353_v7 = vpop.f32.mrf.mxu0  ;;  %v365_v8 = vpop.f32.mrf.mxu1 }
 0x102   : > { %v395_v9 = vadd.f32 %v353_v7, %v282_v5  ;;  %v399_v10 = vadd.f32 %v365_v8, %v286_v6 }
 0x104   : > { %412 = vst.msk [vmem:[#allocation2 + $0x18] sm:$0xff] %vm408_vm1, %v395_v9 }
 0x105   : > { %416 = vst.msk [vmem:[#allocation2 + $0x38] sm:$0xff] %vm408_vm1, %v399_v10  ;;  %v377_v13 = vpop.f32.mrf.mxu2  ;;  %v389_v14 = vpop.f32.mrf.mxu3  ;;  %428 = sbr.rel (%p730_p7) target bundleno = 444 (0x1bc), region = 48 }
 0x106   : > { %v403_v15 = vadd.f32 %v377_v13, %v290_v11  ;;  %v407_v16 = vadd.f32 %v389_v14, %v294_v12 }
 0x108   : > { %420 = vst.msk [vmem:[#allocation2 + $0x58] sm:$0xff] %vm408_vm1, %v403_v15 }
 0x109   : > { %424 = vst.msk [vmem:[#allocation2 + $0x78] sm:$0xff] %vm408_vm1, %v407_v16 }
 0x10a   : > { %v452_v17 = vld [vmem:[%s1428_s2 + $0x38] sm:$0xff]  ;;  %v451_v18 = vld [vmem:[%s1428_s2 + $0x30] sm:$0xff]  ;;  %v450_v19 = vld [vmem:[%s1428_s2 + $0x28] sm:$0xff] }
 0x10b   : > { %802 = vmatpush.msra.mxu2 %v452_v17  ;;  %803 = vmatpush.msra.mxu3 %v452_v17  ;;  %v449_v20 = vld [vmem:[%s1428_s2 + $0x20] sm:$0xff]  ;;  %v448_v21 = vld [vmem:[%s1428_s2 + $0x18] sm:$0xff]  ;;  %v447_v22 = vld [vmem:[%s1428_s2 + $0x10] sm:$0xff] }
 0x10c   : > { %513 = vmatpush.msra.mxu0 %v452_v17  ;;  %801 = vmatpush.msra.mxu1 %v452_v17  ;;  %v446_v23 = vld [vmem:[%s1428_s2 + $0x8] sm:$0xff]  ;;  %v445_v24 = vld [vmem:[%s1428_s2] sm:$0xff]  ;;  %v439_v33 = vld [vmem:[#allocation2 + $0x50] sm:$0xff] }
 0x10d   : > { %805 = vmatpush.msra.mxu2 %v451_v18  ;;  %806 = vmatpush.msra.mxu3 %v451_v18  ;;  %v437_v25 = vld [vmem:[#allocation2 + $0x40] sm:$0xff]  ;;  %v438_v29 = vld [vmem:[#allocation2 + $0x48] sm:$0xff]  ;;  %v443_v34 = vld [vmem:[#allocation2 + $0x70] sm:$0xff] }
 0x10e   : > { %514 = vmatpush.msra.mxu0 %v451_v18  ;;  %804 = vmatpush.msra.mxu1 %v451_v18  ;;  %v441_v26 = vld [vmem:[#allocation2 + $0x60] sm:$0xff]  ;;  %v442_v30 = vld [vmem:[#allocation2 + $0x68] sm:$0xff]  ;;  %v431_v35 = vld [vmem:[#allocation2 + $0x10] sm:$0xff] }
 0x10f   : > { %808 = vmatpush.msra.mxu2 %v450_v19  ;;  %809 = vmatpush.msra.mxu3 %v450_v19  ;;  %v429_v27 = vld [vmem:[#allocation2] sm:$0xff]  ;;  %v430_v31 = vld [vmem:[#allocation2 + $0x8] sm:$0xff]  ;;  %v435_v36 = vld [vmem:[#allocation2 + $0x30] sm:$0xff] }
 0x110   : > { %515 = vmatpush.msra.mxu0 %v450_v19  ;;  %807 = vmatpush.msra.mxu1 %v450_v19  ;;  %v433_v28 = vld [vmem:[#allocation2 + $0x20] sm:$0xff]  ;;  %v434_v32 = vld [vmem:[#allocation2 + $0x28] sm:$0xff]  ;;  %v440_v37 = vld [vmem:[#allocation2 + $0x58] sm:$0xff] }
 0x111   : > { %811 = vmatpush.msra.mxu2 %v449_v20  ;;  %812 = vmatpush.msra.mxu3 %v449_v20  ;;  %v444_v38 = vld [vmem:[#allocation2 + $0x78] sm:$0xff]  ;;  %v934_v41 = vld [vmem:[%s1429_s3] ss:$0 sm:$0xff] }
 0x112   : > { %516 = vmatpush.msra.mxu0 %v449_v20  ;;  %810 = vmatpush.msra.mxu1 %v449_v20  ;;  %v432_v39 = vld [vmem:[#allocation2 + $0x18] sm:$0xff] }
 0x113   : > { %814 = vmatpush.msra.mxu2 %v448_v21  ;;  %815 = vmatpush.msra.mxu3 %v448_v21  ;;  %v436_v40 = vld [vmem:[#allocation2 + $0x38] sm:$0xff] }
 0x114   : > { %517 = vmatpush.msra.mxu0 %v448_v21  ;;  %813 = vmatpush.msra.mxu1 %v448_v21 }
 0x115   : > { %817 = vmatpush.msra.mxu2 %v447_v22  ;;  %818 = vmatpush.msra.mxu3 %v447_v22 }
 0x116   : > { %518 = vmatpush.msra.mxu0 %v447_v22  ;;  %816 = vmatpush.msra.mxu1 %v447_v22 }
 0x117   : > { %820 = vmatpush.msra.mxu2 %v446_v23  ;;  %821 = vmatpush.msra.mxu3 %v446_v23 }
 0x118   : > { %519 = vmatpush.msra.mxu0 %v446_v23  ;;  %819 = vmatpush.msra.mxu1 %v446_v23 }
 0x119   : > { %823 = vmatpush.msra.mxu2 %v445_v24  ;;  %824 = vmatpush.msra.mxu3 %v445_v24 }
 0x11a   : > { %739 = vmatmul.msk.f32.vlgmr.msra.gmra.mxu2 %vm408_vm1, %v437_v25  ;;  %743 = vmatmul.msk.f32.vlgmr.msra.gmra.mxu3 %vm408_vm1, %v441_v26 }
 0x11b   : > { %520 = vmatpush.msra.mxu0 %v445_v24  ;;  %822 = vmatpush.msra.mxu1 %v445_v24 }
 0x11c   : > { %731 = vmatmul.msk.f32.vlgmr.msra.gmra.mxu0 %vm408_vm1, %v429_v27  ;;  %735 = vmatmul.msk.f32.vlgmr.msra.gmra.mxu1 %vm408_vm1, %v433_v28 }
 0x122   : > { %740 = vmatmul.msk.f32.gmra.mxu2 %vm408_vm1, %v438_v29  ;;  %744 = vmatmul.msk.f32.gmra.mxu3 %vm408_vm1, %v442_v30 }
 0x124   : > { %732 = vmatmul.msk.f32.gmra.mxu0 %vm408_vm1, %v430_v31  ;;  %736 = vmatmul.msk.f32.gmra.mxu1 %vm408_vm1, %v434_v32 }
 0x12a   : > { %741 = vmatmul.msk.f32.gmra.mxu2 %vm408_vm1, %v439_v33  ;;  %745 = vmatmul.msk.f32.gmra.mxu3 %vm408_vm1, %v443_v34 }
 0x12c   : > { %733 = vmatmul.msk.f32.gmra.mxu0 %vm408_vm1, %v431_v35  ;;  %737 = vmatmul.msk.f32.gmra.mxu1 %vm408_vm1, %v435_v36 }
 0x132   : > { %742 = vmatmul.msk.f32.gmra.mxu2 %vm408_vm1, %v440_v37  ;;  %746 = vmatmul.msk.f32.gmra.mxu3 %vm408_vm1, %v444_v38 }
 0x134   : > { %734 = vmatmul.msk.f32.gmra.mxu0 %vm408_vm1, %v432_v39  ;;  %738 = vmatmul.msk.f32.gmra.mxu1 %vm408_vm1, %v436_v40 }
 0x199   : > { %v522_v42 = vpop.f32.mrf.mxu0  ;;  %v534_v43 = vpop.f32.mrf.mxu1 }
 0x19a   : > { %v523_v44 = vadd.f32 %v934_v41, %v522_v42  ;;  %v535_v45 = vadd.f32 %v934_v41, %v534_v43 }
 0x19c   : > { %v570_v46 = vmax.f32 %v523_v44, 0.0  ;;  %v574_v47 = vmax.f32 %v535_v45, 0.0 }
 0x19d   : > { %v546_v48 = vpop.f32.mrf.mxu2  ;;  %v558_v49 = vpop.f32.mrf.mxu3 }
 0x19e   : > { %586 = vst [vmem:[%s1245_s18] sm:$0xff] %v570_v46  ;;  %v547_v50 = vadd.f32 %v934_v41, %v546_v48  ;;  %v559_v51 = vadd.f32 %v934_v41, %v558_v49 }
 0x19f   : > { %590 = vst [vmem:[%s1245_s18 + $0x20] sm:$0xff] %v574_v47 }
 0x1a0   : > { %v578_v52 = vmax.f32 %v547_v50, 0.0  ;;  %v582_v53 = vmax.f32 %v559_v51, 0.0 }
 0x1a1   : > { %v525_v54 = vpop.f32.mrf.mxu0  ;;  %v537_v55 = vpop.f32.mrf.mxu1 }
 0x1a2   : > { %594 = vst [vmem:[%s1245_s18 + $0x40] sm:$0xff] %v578_v52  ;;  %v526_v56 = vadd.f32 %v934_v41, %v525_v54  ;;  %v538_v57 = vadd.f32 %v934_v41, %v537_v55 }
 0x1a3   : > { %598 = vst [vmem:[%s1245_s18 + $0x60] sm:$0xff] %v582_v53 }
 0x1a4   : > { %v571_v58 = vmax.f32 %v526_v56, 0.0  ;;  %v575_v59 = vmax.f32 %v538_v57, 0.0 }
 0x1a5   : > { %v549_v60 = vpop.f32.mrf.mxu2  ;;  %v561_v61 = vpop.f32.mrf.mxu3 }
 0x1a6   : > { %587 = vst [vmem:[%s1245_s18 + $0x8] sm:$0xff] %v571_v58  ;;  %v550_v62 = vadd.f32 %v934_v41, %v549_v60  ;;  %v562_v63 = vadd.f32 %v934_v41, %v561_v61 }
 0x1a7   : > { %591 = vst [vmem:[%s1245_s18 + $0x28] sm:$0xff] %v575_v59 }
 0x1a8   : > { %v579_v0 = vmax.f32 %v550_v62, 0.0  ;;  %v583_v1 = vmax.f32 %v562_v63, 0.0 }
 0x1a9   : > { %v528_v2 = vpop.f32.mrf.mxu0  ;;  %v540_v3 = vpop.f32.mrf.mxu1 }
 0x1aa   : > { %595 = vst [vmem:[%s1245_s18 + $0x48] sm:$0xff] %v579_v0  ;;  %v529_v4 = vadd.f32 %v934_v41, %v528_v2  ;;  %v541_v5 = vadd.f32 %v934_v41, %v540_v3 }
 0x1ab   : > { %599 = vst [vmem:[%s1245_s18 + $0x68] sm:$0xff] %v583_v1 }
 0x1ac   : > { %v572_v6 = vmax.f32 %v529_v4, 0.0  ;;  %v576_v7 = vmax.f32 %v541_v5, 0.0 }
 0x1ad   : > { %v552_v8 = vpop.f32.mrf.mxu2  ;;  %v564_v9 = vpop.f32.mrf.mxu3 }
 0x1ae   : > { %588 = vst [vmem:[%s1245_s18 + $0x10] sm:$0xff] %v572_v6  ;;  %v553_v10 = vadd.f32 %v934_v41, %v552_v8  ;;  %v565_v11 = vadd.f32 %v934_v41, %v564_v9 }
 0x1af   : > { %592 = vst [vmem:[%s1245_s18 + $0x30] sm:$0xff] %v576_v7 }
 0x1b0   : > { %v580_v12 = vmax.f32 %v553_v10, 0.0  ;;  %v584_v13 = vmax.f32 %v565_v11, 0.0 }
 0x1b1   : > { %v531_v14 = vpop.f32.mrf.mxu0  ;;  %v543_v15 = vpop.f32.mrf.mxu1 }
 0x1b2   : > { %596 = vst [vmem:[%s1245_s18 + $0x50] sm:$0xff] %v580_v12  ;;  %v532_v16 = vadd.f32 %v934_v41, %v531_v14  ;;  %v544_v17 = vadd.f32 %v934_v41, %v543_v15 }
 0x1b3   : > { %600 = vst [vmem:[%s1245_s18 + $0x70] sm:$0xff] %v584_v13 }
 0x1b4   : > { %v573_v18 = vmax.f32 %v532_v16, 0.0  ;;  %v577_v19 = vmax.f32 %v544_v17, 0.0 }
 0x1b5   : > { %v555_v20 = vpop.f32.mrf.mxu2  ;;  %v567_v21 = vpop.f32.mrf.mxu3 }
 0x1b6   : > { %589 = vst [vmem:[%s1245_s18 + $0x18] sm:$0xff] %v573_v18  ;;  %v556_v22 = vadd.f32 %v934_v41, %v555_v20  ;;  %v568_v23 = vadd.f32 %v934_v41, %v567_v21 }
 0x1b7   : > { %593 = vst [vmem:[%s1245_s18 + $0x38] sm:$0xff] %v577_v19 }
 0x1b8   : > { %v581_v24 = vmax.f32 %v556_v22, 0.0  ;;  %v585_v25 = vmax.f32 %v568_v23, 0.0 }
 0x1ba   : > { %597 = vst [vmem:[%s1245_s18 + $0x58] sm:$0xff] %v581_v24 }
 0x1bb   : > { %601 = vst [vmem:[%s1245_s18 + $0x78] sm:$0xff] %v585_v25 }
 0x1bc PF: > { %s752_s7 = sshll.u32 %s1075_s22, 7  ;;  %s615_s21 = sshll.u32 %s1245_s18, 4  ;;  %s616_s21 = int_to_ptr.vmem [resolvable:$true] %s615_s21 }
 0x1bd   : > { %s614_s6 = scalar_lea.hbm %s1430_s4, %s752_s7  ;;  %s603_s5 = scalar_lea.sflag [#allocation5], %s247_s17 }
 0x1be   : > { %s617_s26 = sshll.u32 %s614_s6, 4  ;;  %s985_s22 = scalar_lea.hbm %s1430_s4, 384  ;;  %s618_s26 = int_to_ptr.hbm [resolvable:$true] %s617_s26 }
 0x1bf   : > { %s979_s9 = sshra.s32 %s618_s26, 4  ;;  %s980_s9 = int_to_ptr.hbm [resolvable:$true] %s979_s9 }
 0x1c0   : > { %s981_s20 = scalar_lea.hbm %s980_s9, 128  ;;  %p986_p0 = scmp.lt.s32.totalorder %s980_s9, %s1430_s4 }
 0x1c1   : > { %p982_p10 = scmp.ne.s32.totalorder %s980_s9, %s981_s20  ;;  %p987_p1 = scmp.lt.s32.totalorder %s985_s22, %s981_s20 }
 0x1c3   : > { %p983_p11 = pnand %p982_p10, %p1202_p12  ;;  %p988_p4 = por %p987_p1, %p986_p0 }
 0x1c5   : > { %p984_p13 = pneg %p983_p11 }
 0x1c7   : > { %p989_p5 = pnand %p988_p4, %p984_p13 }
 0x1c9   : > { %992 = shalt.err (!%p989_p5)
}
 0x1ca   : > { %s1093_s17 = smov 128   ;;  %s1094_s18 = smov 8  }
 0x1cb   : > { %828 = dma.vmem_to_hbm [thread:$0]  (%p1202_p12), %s616_s21, 2048, %s618_s26, %s603_s5, %s1093_s17, %s1093_s17, %s1094_s18  }
 0x1cc PF: > { %p839_p6 = scmp.ge.s32.totalorder %s1087_s25, 2  ;;  %s632_s8 = sand.u32 1, %s1047_s15  }
 0x1cd   : > { %s633_s10 = scalar_lea.sflag [#allocation5], %s632_s8 }
 0x1ce   : > { %p835_p8 = pnand %p839_p6, %p1215_p2 }
 0x1d0   : > { %p836_p3 = pneg %p835_p8 }
 0x1d2   : > { %1042 = dma.done.wait (%p836_p3), %s633_s10, 2048  }
 0x1d3   : > { %1044 = vsyncadd (%p836_p3), %s633_s10, 4294965248  ;;  %s20_s25 = sadd.s32 1, %s1087_s25   ;;  %s1448_s7 = sld [smem:[#allocation9_spill]] }
 0x1d4   : > { %p17_p9 = scmp.ge.s32.totalorder %s20_s25, 11   ;;  %s1449_s17 = sld [smem:[#allocation13_spill]] }
 0x1d5   : > { %s1450_s11 = sld [smem:[#allocation10_spill]]  ;;  %s1454_s15 = smov %s1051_s16 }
 0x1d6   : > { %s1451_s20 = sld [smem:[#allocation14_spill]]  ;;  %s1456_s18 = smov %s1063_s19 }
 0x1d7   : > { %s1452_s30 = sld [smem:[#allocation11_spill]]  ;;  %s1458_s21 = smov %s1079_s23 }
 0x1d8   : > { %s1453_s27 = sld [smem:[#allocation12_spill]]  ;;  %s1459_s22 = smov %s1083_s24 }
 0x1d9   : > { %s1455_s16 = smov %s1448_s7 }
 0x1da   :  { %19 = sbr.rel (!%p17_p9) target bundleno = 9 (0x9), region = 92 }
 0x1db   : > { %s1457_s19 = smov %s1450_s11 }
 0x1dd   : > { %s1460_s23 = smov %s1452_s30 }
 0x1de   : > { %s1461_s24 = smov %s1453_s27 }
 0x1df   :  { %639 = vsyncpa [#allocation4], 1 }
 0x1e0   :  { %641 = vsyncpa [#allocation4 + $0x1], 1 }
 0x1e1   :  { %642 = vsyncpa [#allocation5], 1 }
 0x1e2   :  { %644 = vsyncpa [#allocation5 + $0x1], 1 }

</bundles_post_ra>
